<compile_context>
chip_gen: v7x
topology: tpu7x:2x2x1
jax: 0.10.0
libtpu: 0.0.40
codegen_flags: <defaults>
</compile_context>

<pallas_src>
import functools

import jax
import jax.numpy as jnp
from jax.experimental import pallas as pl
from jax.experimental.pallas import tpu as pltpu


def _tversky_ce_partial_kernel(preds_ref, tgt_ref, tv_ref, ce_ref,
                               tp_acc, cnt_acc, sp_acc, ce_acc, *,
                               alpha, beta, smooth, num_pixels, ragged):
    s = pl.program_id(1)

    @pl.when(s == 0)
    def _():
        tp_acc[...] = jnp.zeros_like(tp_acc)
        cnt_acc[...] = jnp.zeros_like(cnt_acc)
        sp_acc[...] = jnp.zeros_like(sp_acc)
        ce_acc[...] = jnp.zeros_like(ce_acc)

    logits = preds_ref[0].astype(jnp.float32)       # (C, T)  cast AFTER the DMA
    tgt = tgt_ref[0]                                 # (1, T) int32
    C, T = logits.shape

    if ragged:
        # Lane-validity mask for the (possibly partial) last spatial tile.
        col = jax.lax.broadcasted_iota(jnp.int32, (1, T), 1) + s * T
        valid = col < num_pixels                     # (1, T) bool
        tgt = jnp.where(valid, tgt, -1)              # garbage lanes -> no class

    # Numerically-stable softmax pieces over the channel (sublane) axis.
    m = jnp.max(logits, axis=0, keepdims=True)       # (1, T)
    e = jnp.exp(logits - m)                          # (C, T)
    z = jnp.sum(e, axis=0, keepdims=True)            # (1, T)
    inv_z = 1.0 / z                                  # only (1,T) divides
    logz = jnp.log(z)                                # (1, T)
    p = e * inv_z                                    # softmax (C, T)

    # One-hot targets via broadcasted iota (zero for invalid / masked lanes).
    cls = jax.lax.broadcasted_iota(jnp.int32, (C, T), 0)
    oh = (cls == tgt).astype(jnp.float32)            # (C, T)

    # Cross entropy per pixel without materializing full log-softmax:
    #   -log p[target] = m + log(z) - logits[target]
    logit_t = jnp.sum(logits * oh, axis=0, keepdims=True)   # (1, T)
    ce_pix = m + logz - logit_t                              # (1, T)

    if ragged:
        p = jnp.where(valid, p, 0.0)                 # kill garbage columns
        ce_pix = jnp.where(valid, ce_pix, 0.0)

    # Per-batch partial reductions over the lane (spatial) axis.
    tp_acc[...] += jnp.sum(p * oh, axis=1, keepdims=True)    # (C, 1)
    cnt_acc[...] += jnp.sum(oh, axis=1, keepdims=True)       # (C, 1)
    sp_acc[...] += jnp.sum(p, axis=1, keepdims=True)         # (C, 1)
    ce_acc[...] += jnp.sum(ce_pix, keepdims=True)            # (1, 1)

    @pl.when(s == pl.num_programs(1) - 1)
    def _():
        tp = tp_acc[...]
        fn = cnt_acc[...] - tp                       # sum((1-p)*oh)
        fp = sp_acc[...] - tp                        # sum(p*(1-oh))
        tversky = (tp + smooth) / (tp + alpha * fn + beta * fp + smooth)  # (C,1)
        tv_ref[...] = jnp.broadcast_to(
            jnp.sum(tversky, keepdims=True), tv_ref.shape).astype(tv_ref.dtype)
        ce_ref[...] = jnp.broadcast_to(ce_acc[...], ce_ref.shape).astype(ce_ref.dtype)


def _choose_spatial_tile(HW, C, itemsize, override=None):
    """Pick a lane tile T (multiple of 128) sized for the smallest VMEM budget
    across v5e/v6e/v7x. Returns (T, num_tiles, ragged)."""
    LANE = 128
    if override is not None:
        t = int(override)
        if t >= HW:
            return HW, 1, False
        assert t % LANE == 0, "spatial_tile must be a multiple of 128"
    else:
        budget = 8 * 1024 * 1024                     # conservative vs 16 MiB (v5e)
        per_lane = 2 * (C * itemsize + 4)            # double-buffered logits + int32 tgt
        t = (budget // per_lane // LANE) * LANE
        t = max(LANE, min(t, 32 * 1024))
        if HW <= t:
            return HW, 1, False
    num_tiles = -(-HW // t)
    return t, num_tiles, (HW % t != 0)


def combined_tversky_ce_loss(preds, targets, *, alpha=0.5, beta=0.5,
                             smooth=1e-5, ce_weight=0.5, tversky_weight=0.5,
                             spatial_tile=None):
    """preds: [B, C, H, W] logits (any float dtype); targets: [B, H, W] ints."""
    B, C, H, W = preds.shape
    HW = H * W
    preds_r = preds.reshape(B, C, HW)                # native dtype, free reshape
    tgt_r = targets.reshape(B, 1, HW).astype(jnp.int32)

    T, num_tiles, ragged = _choose_spatial_tile(
        HW, C, preds_r.dtype.itemsize, spatial_tile)

    kernel = functools.partial(
        _tversky_ce_partial_kernel,
        alpha=float(alpha), beta=float(beta), smooth=float(smooth),
        num_pixels=HW, ragged=ragged)

    tv_b, ce_b = pl.pallas_call(
        kernel,
        out_shape=(jax.ShapeDtypeStruct((B, 1, 128), jnp.float32),
                   jax.ShapeDtypeStruct((B, 1, 128), jnp.float32)),
        grid_spec=pltpu.PrefetchScalarGridSpec(
            num_scalar_prefetch=0,
            grid=(B, num_tiles),
            in_specs=[
                pl.BlockSpec((1, C, T), lambda b, s: (b, 0, s)),
                pl.BlockSpec((1, 1, T), lambda b, s: (b, 0, s)),
            ],
            out_specs=[
                pl.BlockSpec((1, 1, 128), lambda b, s: (b, 0, 0)),
                pl.BlockSpec((1, 1, 128), lambda b, s: (b, 0, 0)),
            ],
            scratch_shapes=[
                pltpu.VMEM((C, 1), jnp.float32),     # TP accumulator
                pltpu.VMEM((C, 1), jnp.float32),     # one-hot count accumulator
                pltpu.VMEM((C, 1), jnp.float32),     # sum(p) accumulator
                pltpu.VMEM((1, 1), jnp.float32),     # CE-sum accumulator
            ],
        ),
        compiler_params=pltpu.CompilerParams(
            dimension_semantics=("parallel", "arbitrary")),
    )(preds_r, tgt_r)

    # Tiny final combine in the wrapper (keeps the batch grid axis parallel).
    tversky_mean = jnp.sum(tv_b[:, 0, 0]) / float(B * C)
    ce_mean = jnp.sum(ce_b[:, 0, 0]) / float(B * HW)
    return (jnp.float32(ce_weight) * ce_mean
            + jnp.float32(tversky_weight) * (1.0 - tversky_mean))


def _reference_loss(preds, targets, alpha=0.5, beta=0.5, smooth=1e-5,
                    ce_weight=0.5, tversky_weight=0.5):
    """Pure-JAX reference matching the PyTorch forward."""
    preds = preds.astype(jnp.float32)
    p = jax.nn.softmax(preds, axis=1)
    oh = jax.nn.one_hot(targets, preds.shape[1], axis=1, dtype=jnp.float32)
    tp = (p * oh).sum(axis=(2, 3))
    fn = ((1.0 - p) * oh).sum(axis=(2, 3))
    fp = (p * (1.0 - oh)).sum(axis=(2, 3))
    tversky = (tp + smooth) / (tp + alpha * fn + beta * fp + smooth)
    tversky_loss = 1.0 - tversky.mean()
    logp = jax.nn.log_softmax(preds, axis=1)
    ce = -(logp * oh).sum(axis=1).mean()
    return ce_weight * ce + tversky_weight * tversky_loss


if __name__ == "__main__":
    key = jax.random.PRNGKey(0)

    # 1) Primary small case: single spatial tile, f32 logits.
    B, C, H, W = 2, 4, 16, 16
    k1, k2 = jax.random.split(key)
    preds = jax.random.normal(k1, (B, C, H, W), dtype=jnp.float32)
    targets = jax.random.randint(k2, (B, H, W), 0, C, dtype=jnp.int32)
    loss = jax.block_until_ready(combined_tversky_ce_loss(preds, targets))
    ref = jax.block_until_ready(_reference_loss(preds, targets))
    assert jnp.allclose(loss, ref, atol=1e-5, rtol=1e-4), (loss, ref)

    # 2) Multi-tile spatial path with bf16 logits shipped in native dtype.
    B2, C2, H2, W2 = 2, 5, 16, 24          # HW = 384 = 3 x 128
    k3, k4 = jax.random.split(k2)
    preds2 = jax.random.normal(k3, (B2, C2, H2, W2), jnp.float32).astype(jnp.bfloat16)
    targets2 = jax.random.randint(k4, (B2, H2, W2), 0, C2, dtype=jnp.int32)
    loss2 = jax.block_until_ready(
        combined_tversky_ce_loss(preds2, targets2, spatial_tile=128))
    ref2 = jax.block_until_ready(_reference_loss(preds2, targets2))
    assert jnp.allclose(loss2, ref2, atol=1e-5, rtol=1e-4), (loss2, ref2)

    # 3) Ragged last spatial tile (HW not a multiple of the tile).
    B3, C3, H3, W3 = 2, 3, 10, 33          # HW = 330 -> tiles 128, 128, 74
    k5, k6 = jax.random.split(k4)
    preds3 = jax.random.normal(k5, (B3, C3, H3, W3), dtype=jnp.float32)
    targets3 = jax.random.randint(k6, (B3, H3, W3), 0, C3, dtype=jnp.int32)
    loss3 = jax.block_until_ready(
        combined_tversky_ce_loss(preds3, targets3, spatial_tile=128))
    ref3 = jax.block_until_ready(_reference_loss(preds3, targets3))
    assert jnp.allclose(loss3, ref3, atol=1e-5, rtol=1e-4), (loss3, ref3)

    print("KERNEL_OK")
</pallas_src>

<mosaic_0001>
module attributes {stable_mosaic.version = 11 : i64} {
  func.func @_tversky_ce_partial_kernel(%arg0: i32, %arg1: i32, %arg2: memref<1x4x256xf32, #tpu.memory_space<vmem>>, %arg3: memref<1x1x256xi32, #tpu.memory_space<vmem>>, %arg4: memref<1x1x128xf32, #tpu.memory_space<vmem>>, %arg5: memref<1x1x128xf32, #tpu.memory_space<vmem>>, %arg6: memref<4x1xf32, #tpu.memory_space<vmem>>, %arg7: memref<4x1xf32, #tpu.memory_space<vmem>>, %arg8: memref<4x1xf32, #tpu.memory_space<vmem>>, %arg9: memref<1x1xf32, #tpu.memory_space<vmem>>) attributes {dimension_semantics = [#tpu.dimension_semantics<parallel>, #tpu.dimension_semantics<arbitrary>], iteration_bounds = array<i64: 2, 1>, scalar_prefetch = 0 : i64, scratch_operands = 4 : i64, tpu.core_type = #tpu.core_type<tc>, window_params = [{transform_indices = @transform_0, window_bounds = array<i64: 1, 4, 256>}, {transform_indices = @transform_1, window_bounds = array<i64: 1, 1, 256>}, {transform_indices = @transform_2, window_bounds = array<i64: 1, 1, 128>}, {transform_indices = @transform_3, window_bounds = array<i64: 1, 1, 128>}]} {
    %c0_i32 = arith.constant 0 : i32
    %0 = arith.cmpi eq, %arg1, %c0_i32 : i32
    %1 = arith.extui %0 : i1 to i32
    %c0_i32_0 = arith.constant 0 : i32
    %2 = arith.cmpi ne, %1, %c0_i32_0 : i32
    scf.if %2 {
      %cst_31 = arith.constant 0.000000e+00 : f32
      %56 = vector.broadcast %cst_31 : f32 to vector<4x1xf32>
      %c0_32 = arith.constant 0 : index
      %c0_33 = arith.constant 0 : index
      %57 = vector.load %arg6[%c0_32, %c0_33] : memref<4x1xf32, #tpu.memory_space<vmem>>, vector<4x1xf32>
      tpu.vector_store %arg6[%c0_32, %c0_33], %56 {strides = array<i32>} : memref<4x1xf32, #tpu.memory_space<vmem>>, vector<4x1xf32>,
      %cst_34 = arith.constant 0.000000e+00 : f32
      %58 = vector.broadcast %cst_34 : f32 to vector<4x1xf32>
      %c0_35 = arith.constant 0 : index
      %c0_36 = arith.constant 0 : index
      %59 = vector.load %arg7[%c0_35, %c0_36] : memref<4x1xf32, #tpu.memory_space<vmem>>, vector<4x1xf32>
      tpu.vector_store %arg7[%c0_35, %c0_36], %58 {strides = array<i32>} : memref<4x1xf32, #tpu.memory_space<vmem>>, vector<4x1xf32>,
      %cst_37 = arith.constant 0.000000e+00 : f32
      %60 = vector.broadcast %cst_37 : f32 to vector<4x1xf32>
      %c0_38 = arith.constant 0 : index
      %c0_39 = arith.constant 0 : index
      %61 = vector.load %arg8[%c0_38, %c0_39] : memref<4x1xf32, #tpu.memory_space<vmem>>, vector<4x1xf32>
      tpu.vector_store %arg8[%c0_38, %c0_39], %60 {strides = array<i32>} : memref<4x1xf32, #tpu.memory_space<vmem>>, vector<4x1xf32>,
      %cst_40 = arith.constant 0.000000e+00 : f32
      %62 = vector.broadcast %cst_40 : f32 to vector<1x1xf32>
      %c0_41 = arith.constant 0 : index
      %c0_42 = arith.constant 0 : index
      %63 = vector.load %arg9[%c0_41, %c0_42] : memref<1x1xf32, #tpu.memory_space<vmem>>, vector<1x1xf32>
      tpu.vector_store %arg9[%c0_41, %c0_42], %62 {strides = array<i32>} : memref<1x1xf32, #tpu.memory_space<vmem>>, vector<1x1xf32>,
    } else {
    }
    %c0 = arith.constant 0 : index
    %c0_1 = arith.constant 0 : index
    %c0_2 = arith.constant 0 : index
    %3 = vector.load %arg2[%c0, %c0_1, %c0_2] : memref<1x4x256xf32, #tpu.memory_space<vmem>>, vector<1x4x256xf32>
    %4 = vector.shape_cast %3 : vector<1x4x256xf32> to vector<4x256xf32>
    %c0_3 = arith.constant 0 : index
    %c0_4 = arith.constant 0 : index
    %c0_5 = arith.constant 0 : index
    %5 = vector.load %arg3[%c0_3, %c0_4, %c0_5] : memref<1x1x256xi32, #tpu.memory_space<vmem>>, vector<1x1x256xi32>
    %6 = vector.shape_cast %5 : vector<1x1x256xi32> to vector<1x256xi32>
    %cst = arith.constant dense<0xFF800000> : vector<256xf32>
    %7 = vector.multi_reduction <maximumf>, %4, %cst [0] : vector<4x256xf32> to vector<256xf32>
    %8 = vector.shape_cast %7 : vector<256xf32> to vector<1x256xf32>
    %9 = vector.broadcast %8 : vector<1x256xf32> to vector<4x256xf32>
    %10 = arith.subf %4, %9 : vector<4x256xf32>
    %11 = math.exp %10 : vector<4x256xf32>
    %cst_6 = arith.constant dense<0.000000e+00> : vector<256xf32>
    %12 = vector.multi_reduction <add>, %11, %cst_6 [0] : vector<4x256xf32> to vector<256xf32>
    %13 = vector.shape_cast %12 : vector<256xf32> to vector<1x256xf32>
    %cst_7 = arith.constant 1.000000e+00 : f32
    %14 = vector.broadcast %cst_7 : f32 to vector<1x256xf32>
    %15 = arith.divf %14, %13 : vector<1x256xf32>
    %16 = math.log %13 : vector<1x256xf32>
    %17 = vector.broadcast %15 : vector<1x256xf32> to vector<4x256xf32>
    %18 = arith.mulf %11, %17 : vector<4x256xf32>
    %19 = tpu.iota {dimensions = array<i32: 0>} : vector<4x256xi32>
    %20 = vector.broadcast %6 : vector<1x256xi32> to vector<4x256xi32>
    %21 = arith.cmpi eq, %19, %20 : vector<4x256xi32>
    %22 = arith.extui %21 : vector<4x256xi1> to vector<4x256xi32>
    %23 = arith.sitofp %22 : vector<4x256xi32> to vector<4x256xf32>
    %24 = arith.mulf %4, %23 : vector<4x256xf32>
    %cst_8 = arith.constant dense<0.000000e+00> : vector<256xf32>
    %25 = vector.multi_reduction <add>, %24, %cst_8 [0] : vector<4x256xf32> to vector<256xf32>
    %26 = vector.shape_cast %25 : vector<256xf32> to vector<1x256xf32>
    %27 = arith.addf %8, %16 : vector<1x256xf32>
    %28 = arith.subf %27, %26 : vector<1x256xf32>
    %c0_9 = arith.constant 0 : index
    %c0_10 = arith.constant 0 : index
    %29 = vector.load %arg6[%c0_9, %c0_10] : memref<4x1xf32, #tpu.memory_space<vmem>>, vector<4x1xf32>
    %30 = arith.mulf %18, %23 : vector<4x256xf32>
    %cst_11 = arith.constant dense<0.000000e+00> : vector<4xf32>
    %31 = vector.multi_reduction <add>, %30, %cst_11 [1] : vector<4x256xf32> to vector<4xf32>
    %32 = vector.shape_cast %31 : vector<4xf32> to vector<4x1xf32>
    %33 = arith.addf %29, %32 : vector<4x1xf32>
    %c0_12 = arith.constant 0 : index
    %c0_13 = arith.constant 0 : index
    %34 = vector.load %arg6[%c0_12, %c0_13] : memref<4x1xf32, #tpu.memory_space<vmem>>, vector<4x1xf32>
    tpu.vector_store %arg6[%c0_12, %c0_13], %33 {strides = array<i32>} : memref<4x1xf32, #tpu.memory_space<vmem>>, vector<4x1xf32>,
    %c0_14 = arith.constant 0 : index
    %c0_15 = arith.constant 0 : index
    %35 = vector.load %arg7[%c0_14, %c0_15] : memref<4x1xf32, #tpu.memory_space<vmem>>, vector<4x1xf32>
    %cst_16 = arith.constant dense<0.000000e+00> : vector<4xf32>
    %36 = vector.multi_reduction <add>, %23, %cst_16 [1] : vector<4x256xf32> to vector<4xf32>
    %37 = vector.shape_cast %36 : vector<4xf32> to vector<4x1xf32>
    %38 = arith.addf %35, %37 : vector<4x1xf32>
    %c0_17 = arith.constant 0 : index
    %c0_18 = arith.constant 0 : index
    %39 = vector.load %arg7[%c0_17, %c0_18] : memref<4x1xf32, #tpu.memory_space<vmem>>, vector<4x1xf32>
    tpu.vector_store %arg7[%c0_17, %c0_18], %38 {strides = array<i32>} : memref<4x1xf32, #tpu.memory_space<vmem>>, vector<4x1xf32>,
    %c0_19 = arith.constant 0 : index
    %c0_20 = arith.constant 0 : index
    %40 = vector.load %arg8[%c0_19, %c0_20] : memref<4x1xf32, #tpu.memory_space<vmem>>, vector<4x1xf32>
    %cst_21 = arith.constant dense<0.000000e+00> : vector<4xf32>
    %41 = vector.multi_reduction <add>, %18, %cst_21 [1] : vector<4x256xf32> to vector<4xf32>
    %42 = vector.shape_cast %41 : vector<4xf32> to vector<4x1xf32>
    %43 = arith.addf %40, %42 : vector<4x1xf32>
    %c0_22 = arith.constant 0 : index
    %c0_23 = arith.constant 0 : index
    %44 = vector.load %arg8[%c0_22, %c0_23] : memref<4x1xf32, #tpu.memory_space<vmem>>, vector<4x1xf32>
    tpu.vector_store %arg8[%c0_22, %c0_23], %43 {strides = array<i32>} : memref<4x1xf32, #tpu.memory_space<vmem>>, vector<4x1xf32>,
    %c0_24 = arith.constant 0 : index
    %c0_25 = arith.constant 0 : index
    %45 = vector.load %arg9[%c0_24, %c0_25] : memref<1x1xf32, #tpu.memory_space<vmem>>, vector<1x1xf32>
    %46 = vector.shape_cast %28 : vector<1x256xf32> to vector<1x1x256xf32>
    %cst_26 = arith.constant dense<0.000000e+00> : vector<1xf32>
    %47 = vector.multi_reduction <add>, %46, %cst_26 [1, 2] : vector<1x1x256xf32> to vector<1xf32>
    %48 = vector.shape_cast %47 : vector<1xf32> to vector<1x1x1xf32>
    %49 = vector.extract %48[0, 0, 0] : f32 from vector<1x1x1xf32>
    %50 = vector.broadcast %49 : f32 to vector<1x1xf32>
    %51 = arith.addf %45, %50 : vector<1x1xf32>
    %c0_27 = arith.constant 0 : index
    %c0_28 = arith.constant 0 : index
    %52 = vector.load %arg9[%c0_27, %c0_28] : memref<1x1xf32, #tpu.memory_space<vmem>>, vector<1x1xf32>
    tpu.vector_store %arg9[%c0_27, %c0_28], %51 {strides = array<i32>} : memref<1x1xf32, #tpu.memory_space<vmem>>, vector<1x1xf32>,
    %c0_i32_29 = arith.constant 0 : i32
    %53 = arith.cmpi eq, %arg1, %c0_i32_29 : i32
    %54 = arith.extui %53 : i1 to i32
    %c0_i32_30 = arith.constant 0 : i32
    %55 = arith.cmpi ne, %54, %c0_i32_30 : i32
    scf.if %55 {
      %c0_31 = arith.constant 0 : index
      %c0_32 = arith.constant 0 : index
      %56 = vector.load %arg6[%c0_31, %c0_32] : memref<4x1xf32, #tpu.memory_space<vmem>>, vector<4x1xf32>
      %c0_33 = arith.constant 0 : index
      %c0_34 = arith.constant 0 : index
      %57 = vector.load %arg7[%c0_33, %c0_34] : memref<4x1xf32, #tpu.memory_space<vmem>>, vector<4x1xf32>
      %58 = arith.subf %57, %56 : vector<4x1xf32>
      %c0_35 = arith.constant 0 : index
      %c0_36 = arith.constant 0 : index
      %59 = vector.load %arg8[%c0_35, %c0_36] : memref<4x1xf32, #tpu.memory_space<vmem>>, vector<4x1xf32>
      %60 = arith.subf %59, %56 : vector<4x1xf32>
      %cst_37 = arith.constant 9.99999974E-6 : f32
      %61 = vector.broadcast %cst_37 : f32 to vector<4x1xf32>
      %62 = arith.addf %56, %61 : vector<4x1xf32>
      %cst_38 = arith.constant 5.000000e-01 : f32
      %63 = vector.broadcast %cst_38 : f32 to vector<4x1xf32>
      %64 = arith.mulf %63, %58 : vector<4x1xf32>
      %65 = arith.addf %56, %64 : vector<4x1xf32>
      %cst_39 = arith.constant 5.000000e-01 : f32
      %66 = vector.broadcast %cst_39 : f32 to vector<4x1xf32>
      %67 = arith.mulf %66, %60 : vector<4x1xf32>
      %68 = arith.addf %65, %67 : vector<4x1xf32>
      %cst_40 = arith.constant 9.99999974E-6 : f32
      %69 = vector.broadcast %cst_40 : f32 to vector<4x1xf32>
      %70 = arith.addf %68, %69 : vector<4x1xf32>
      %71 = arith.divf %62, %70 : vector<4x1xf32>
      %72 = vector.shape_cast %71 : vector<4x1xf32> to vector<1x4x1xf32>
      %cst_41 = arith.constant dense<0.000000e+00> : vector<1xf32>
      %73 = vector.multi_reduction <add>, %72, %cst_41 [1, 2] : vector<1x4x1xf32> to vector<1xf32>
      %74 = vector.shape_cast %73 : vector<1xf32> to vector<1x1x1xf32>
      %75 = vector.extract %74[0, 0, 0] : f32 from vector<1x1x1xf32>
      %76 = vector.broadcast %75 : f32 to vector<1x1xf32>
      %77 = vector.shape_cast %76 : vector<1x1xf32> to vector<1x1x1xf32>
      %78 = vector.broadcast %77 : vector<1x1x1xf32> to vector<1x1x128xf32>
      %c0_42 = arith.constant 0 : index
      %c0_43 = arith.constant 0 : index
      %c0_44 = arith.constant 0 : index
      %79 = vector.load %arg4[%c0_42, %c0_43, %c0_44] : memref<1x1x128xf32, #tpu.memory_space<vmem>>, vector<1x1x128xf32>
      tpu.vector_store %arg4[%c0_42, %c0_43, %c0_44], %78 {strides = array<i32>} : memref<1x1x128xf32, #tpu.memory_space<vmem>>, vector<1x1x128xf32>,
      %c0_45 = arith.constant 0 : index
      %c0_46 = arith.constant 0 : index
      %80 = vector.load %arg9[%c0_45, %c0_46] : memref<1x1xf32, #tpu.memory_space<vmem>>, vector<1x1xf32>
      %81 = vector.shape_cast %80 : vector<1x1xf32> to vector<1x1x1xf32>
      %82 = vector.broadcast %81 : vector<1x1x1xf32> to vector<1x1x128xf32>
      %c0_47 = arith.constant 0 : index
      %c0_48 = arith.constant 0 : index
      %c0_49 = arith.constant 0 : index
      %83 = vector.load %arg5[%c0_47, %c0_48, %c0_49] : memref<1x1x128xf32, #tpu.memory_space<vmem>>, vector<1x1x128xf32>
      tpu.vector_store %arg5[%c0_47, %c0_48, %c0_49], %82 {strides = array<i32>} : memref<1x1x128xf32, #tpu.memory_space<vmem>>, vector<1x1x128xf32>,
    } else {
    }
    return
  }
  func.func @transform_0(%arg0: i32, %arg1: i32) -> (i32, i32, i32) {
    %c0_i32 = arith.constant 0 : i32
    %c0_i32_0 = arith.constant 0 : i32
    return %arg0, %c0_i32, %arg1 : i32, i32, i32
  }
  func.func @transform_1(%arg0: i32, %arg1: i32) -> (i32, i32, i32) {
    %c0_i32 = arith.constant 0 : i32
    %c0_i32_0 = arith.constant 0 : i32
    return %arg0, %c0_i32, %arg1 : i32, i32, i32
  }
  func.func @transform_2(%arg0: i32, %arg1: i32) -> (i32, i32, i32) {
    %c0_i32 = arith.constant 0 : i32
    %c0_i32_0 = arith.constant 0 : i32
    %c0_i32_1 = arith.constant 0 : i32
    return %arg0, %c0_i32, %c0_i32_0 : i32, i32, i32
  }
  func.func @transform_3(%arg0: i32, %arg1: i32) -> (i32, i32, i32) {
    %c0_i32 = arith.constant 0 : i32
    %c0_i32_0 = arith.constant 0 : i32
    %c0_i32_1 = arith.constant 0 : i32
    return %arg0, %c0_i32, %c0_i32_0 : i32, i32, i32
  }
}

</mosaic_0001>

<bundles_post_ra>
// kernel: tpu_custom_call.1
= control target key start
LH: loop header
LB: loop body
LE: loop exit
PB: predicated region body
PF: predicated region fallthrough
CT: control target
= control target key end

     0   :  { %9 = vsyncpa [#allocation7], 0  ;;  %s1222_s0 = inlined_call_operand.hbm [shape: f32[2,4,256], index: 0, kind: input, shape index: {}]   ;;  %s1223_s1 = inlined_call_operand.hbm [shape: s32[2,1,256], index: 1, kind: input, shape index: {}]   ;;  %s1224_s2 = inlined_call_operand.hbm [shape: f32[2,1,128], index: 2, kind: output, shape index: {0}]   ;;  %s1225_s3 = inlined_call_operand.hbm [shape: f32[2,1,128], index: 3, kind: output, shape index: {1}]  }
   0x1   :  { %11 = vsyncpa [#allocation7 + $0x1], 0 }
   0x2   :  { %12 = vsyncpa [#allocation10], 0 }
   0x3   :  { %14 = vsyncpa [#allocation10 + $0x1], 0 }
   0x4   :  { %15 = vsyncpa [#allocation8], 0 }
   0x5   :  { %17 = vsyncpa [#allocation8 + $0x1], 0 }
   0x6   :  { %18 = vsyncpa [#allocation13], 0 }
   0x7   :  { %20 = vsyncpa [#allocation13 + $0x1], 0  ;;  %s935_s12 = smov 0   ;;  %s937_s13 = smov 0  }
   0x8   :  { %s939_s14 = smov 0   ;;  %s941_s15 = smov 0  }
   0x9   :  { %s943_s16 = smov 0   ;;  %s945_s17 = smov 0  }
   0xa LB: > { %s615_s18 = sadd.s32 4294967295, %s907_s17   ;;  %s616_s19 = sadd.s32 4294967294, %s907_s17   ;;  %s907_s17 = sphi %s945_s17, %s26_s17   ;;  %s903_s16 = sphi %s943_s16, %s1245_s16   ;;  %s899_s15 = sphi %s941_s15, %s1244_s15   ;;  %s895_s14 = sphi %s939_s14, %s1243_s14   ;;  %s891_s13 = sphi %s937_s13, %s1242_s13   ;;  %s887_s12 = sphi %s935_s12, %s1241_s12  }
   0xb   : > { %s38_s20 = sadd.s32 1, %s903_s16  ;;  %s47_s21 = sadd.s32 1, %s895_s14 }
   0xc   : > { %p40_p0 = scmp.ge.s32.totalorder %s38_s20, 2  ;;  %p54_p1 = scmp.ne.s32.totalorder %s895_s14, %s891_s13 }
   0xd   : > { %p55_p2 = scmp.eq.s32.totalorder %s907_s17, 0  ;;  %p60_p3 = scmp.ne.s32.totalorder %s891_s13, %s887_s12 }
   0xe   : > { %s1247_s20 = smov (%p40_p0, %s38_s20), 0  ;;  %p61_p5 = scmp.eq.s32.totalorder %s615_s18, 0 }
   0xf   : > { %p976_p4 = por %p55_p2, %p54_p1  ;;  %s42_s23 = ssub.s32 %s903_s16, %s1247_s20 }
  0x10   : > { %p112_p6 = scmp.eq.s32.totalorder %s615_s18, 1  ;;  %p45_p7 = scmp.eq.s32.totalorder %s42_s23, 0 }
  0x11   : > { %p982_p8 = por %p61_p5, %p60_p3  ;;  %p118_p10 = scmp.eq.s32.totalorder %s616_s19, 1 }
  0x12   : > { %p986_p9 = por %p112_p6, %p54_p1  ;;  %p662_p13 = scmp.lt.s32.totalorder %s907_s17, 2 }
  0x13   : > { %s1229_s24 = scalar_select %p982_p8, 1, 0 }
  0x14   : > { %s1230_s25 = scalar_select %p986_p9, 1, 0 }
  0x15   : > { %s991_s26 = scalar_select %p45_p7, %s895_s14, %s47_s21  }
  0x16   : > { %p993_p11 = por %p118_p10, %p60_p3  ;;  %s1000_s28 = sand.u32 1, %s895_s14  }
  0x17   : > { %s619_s29 = sshll.u32 %s1000_s28, 3  ;;  %s634_s30 = sshll.u32 %s903_s16, 7 }
  0x18   : > { %s1231_s27 = scalar_select %p993_p11, 1, 0 }
  0x19   : > { %s1007_s6 = scalar_lea.hbm %s1222_s0, %s634_s30  ;;  %s168_s7 = scalar_lea.vmem [#allocation6], %s619_s29 }
  0x1a   : > { %s178_s8 = sshll.u32 %s168_s7, 4  ;;  %p1013_p0 = pnand %p662_p13, %p976_p4  ;;  %s1009_s8 = int_to_ptr.vmem [resolvable:$true] %s178_s8 }
  0x1b   : > { %s165_s10 = scalar_lea.sflag [#allocation7], %s1000_s28  ;;  %s729_s11 = scalar_lea.hbm %s1007_s6, 128 }
  0x1c   : > { %p730_p3 = scmp.ne.s32.totalorder %s1007_s6, %s729_s11  ;;  %p731_p5 = pneg %p1013_p0 }
  0x1d   : > { %s734_s21 = scalar_lea.hbm %s1222_s0, 256  ;;  %p735_p4 = scmp.lt.u32.totalorder %s1007_s6, %s1222_s0 }
  0x1e   : > { %p732_p6 = pnand %p731_p5, %p730_p3  ;;  %p736_p10 = scmp.lt.u32.totalorder %s734_s21, %s729_s11 }
  0x1f   : > { %p738_p12 = scmp.lt.u32.totalorder %s729_s11, %s1007_s6 }
  0x20   : > { %p733_p7 = pneg %p732_p6  ;;  %p737_p13 = por %p736_p10, %p735_p4 }
  0x22   : > { %p739_p1 = por %p738_p12, %p737_p13 }
  0x24   : > { %p740_p2 = pnand %p739_p1, %p733_p7 }
  0x26   : > { %743 = shalt.err (!%p740_p2)
}
  0x27   : > { %s744_s29 = scalar_lea.vmem %s1009_s8, 128  ;;  %s909_s30 = smov [#allocation6]  }
  0x28   : > { %p745_p3 = scmp.ne.s32.totalorder %s1009_s8, %s744_s29  ;;  %s749_s4 = sshll.u32 %s909_s30, 4  ;;  %s750_s4 = int_to_ptr.vmem [resolvable:$false] %s749_s4 }
  0x29   : > { %s751_s5 = scalar_lea.vmem %s750_s4, 256  ;;  %p752_p9 = scmp.lt.s32.totalorder %s1009_s8, %s750_s4 }
  0x2a   : > { %p747_p6 = pnand %p745_p3, %p731_p5  ;;  %p753_p4 = scmp.lt.s32.totalorder %s751_s5, %s744_s29 }
  0x2c   : > { %p748_p11 = pneg %p747_p6  ;;  %p754_p10 = por %p753_p4, %p752_p9 }
  0x2e   : > { %p755_p12 = pnand %p754_p10, %p748_p11 }
  0x30   : > { %758 = shalt.err (!%p755_p12)
}
  0x31   : > { %651 = dma.hbm_to_vmem [thread:$0]  (!%p1013_p0), %s1007_s6, 128, %s1009_s8, %s165_s10  }
  0x32   : > { %p1233_p1 = scmp.lt.s32.totalorder %s907_s17, 3  ;;  %p1234_p2 = scmp.ge.s32.totalorder %s907_s17, 1 }
  0x33   : > { %s622_s11 = sshll.u32 %s1000_s28, 1  ;;  %s635_s18 = sshll.u32 %s903_s16, 5 }
  0x34   : > { %p1049_p7 = pnand %p1234_p2, %p1233_p1  ;;  %s1058_s22 = scalar_lea.hbm %s1223_s1, %s635_s18 }
  0x35   : > { %s189_s23 = scalar_lea.vmem [#allocation9], %s622_s11  ;;  %s186_s6 = scalar_lea.sflag [#allocation10], %s1000_s28 }
  0x36   : > { %s1235_s7 = scalar_select %p1049_p7, 1, 0 }
  0x37   : > { %s199_s29 = sshll.u32 %s189_s23, 4  ;;  %s759_s8 = scalar_lea.hbm %s1058_s22, 32  ;;  %s200_s29 = int_to_ptr.vmem [resolvable:$true] %s199_s29 }
  0x38   : > { %p760_p9 = scmp.ne.s32.totalorder %s1058_s22, %s759_s8  ;;  %s764_s4 = scalar_lea.hbm %s1223_s1, 64 }
  0x39   : > { %p765_p3 = scmp.lt.u32.totalorder %s1058_s22, %s1223_s1  ;;  %p766_p6 = scmp.lt.u32.totalorder %s764_s4, %s759_s8 }
  0x3a   : > { %p762_p11 = pnand %p760_p9, %p731_p5  ;;  %p768_p10 = scmp.lt.u32.totalorder %s759_s8, %s1058_s22 }
  0x3b   : > { %p767_p4 = por %p766_p6, %p765_p3 }
  0x3c   : > { %p763_p13 = pneg %p762_p11 }
  0x3d   : > { %p769_p12 = por %p768_p10, %p767_p4 }
  0x3f   : > { %p770_p1 = pnand %p769_p12, %p763_p13 }
  0x41   : > { %773 = shalt.err (!%p770_p1)
}
  0x42   : > { %s774_s28 = scalar_lea.vmem %s200_s29, 32  ;;  %s910_s11 = smov [#allocation9]  }
  0x43   : > { %p775_p2 = scmp.ne.s32.totalorder %s200_s29, %s774_s28  ;;  %s779_s19 = sshll.u32 %s910_s11, 4  ;;  %s780_s19 = int_to_ptr.vmem [resolvable:$false] %s779_s19 }
  0x44   : > { %s781_s21 = scalar_lea.vmem %s780_s19, 64  ;;  %p782_p8 = scmp.lt.s32.totalorder %s200_s29, %s780_s19 }
  0x45   : > { %p777_p9 = pnand %p775_p2, %p731_p5  ;;  %p783_p7 = scmp.lt.s32.totalorder %s781_s21, %s774_s28 }
  0x47   : > { %p778_p11 = pneg %p777_p9  ;;  %p784_p3 = por %p783_p7, %p782_p8 }
  0x49   : > { %p785_p6 = pnand %p784_p3, %p778_p11 }
  0x4b   : > { %788 = shalt.err (!%p785_p6)
}
  0x4c   : > { %654 = dma.hbm_to_vmem [thread:$0]  (!%p1013_p0), %s1058_s22, 32, %s200_s29, %s186_s6  }
  0x4d   : > { %p1236_p13 = scmp.ne.s32.totalorder %s1235_s7, 0 }
  0x4e   : > { %s1083_s23 = sand.u32 (!%p1236_p13), 1, %s891_s13   ;;  %p1237_p5 = scmp.ne.s32.totalorder (!%p1236_p13), %s1229_s24, 0 }
  0x4f   : > { %208 = sbr.rel (%p1236_p13) target bundleno = 559 (0x22f), region = 28  ;;  %s626_s8 = sshll.u32 (!%p1236_p13), %s1083_s23, 3 }
  0x50   : > { %s211_s10 = scalar_lea.sflag (!%p1236_p13), [#allocation7], %s1083_s23  ;;  %s214_s30 = scalar_lea.vmem (!%p1236_p13), [#allocation6], %s626_s8 }
  0x56   : > { %870 = dma.done.wait (%p1237_p5), %s211_s10, 128  }
  0x57   : > { %872 = vsyncadd (%p1237_p5), %s211_s10, 4294967168  ;;  %s627_s9 = sshll.u32 %s1083_s23, 1  ;;  %s220_s7 = scalar_lea.sflag [#allocation10], %s1083_s23 }
  0x58   : > { %s223_s22 = scalar_lea.vmem [#allocation9], %s627_s9 }
  0x59   : > { %874 = dma.done.wait (%p1237_p5), %s220_s7, 32  }
  0x5a   : > { %876 = vsyncadd (%p1237_p5), %s220_s7, 4294967264  ;;  %vm260_vm0 = vcmask 3072   ;;  %v911_v0 = vmov 0.0   ;;  %vm271_vm1 = vcmask 1043456   ;;  %v266_v1 = vld [vmem:[%s214_s30] sm:$0xff]  ;;  %v323_v8 = vlaneseq  ;;  %s630_s29 = sshll.u32 %s899_s15, 4 }
  0x5b   : > { %263 = vst.msk [vmem:[#allocation4] sm:$0xf] %vm260_vm0, %v911_v0  ;;  %261 = vst.msk [vmem:[#allocation2] sm:$0xf] %vm260_vm0, %v911_v0  ;;  %v269_v2 = vcombine.high %v266_v1, %v266_v1  ;;  %v272_v3 = vsel %vm271_vm1, %v266_v1, -inf  ;;  %vm398_vm4 = vcmask 1040384   ;;  %s1141_s28 = scalar_lea.hbm %s1225_s3, %s630_s29 }
  0x5c   : > { %262 = vst.msk [vmem:[#allocation3] sm:$0xf] %vm260_vm0, %v911_v0  ;;  %v273_v4 = vrot.slane %v272_v3, 4  ;;  %v1105_v13 = vshrl.u32 %v323_v8, 7  ;;  %v267_v21 = vld [vmem:[%s223_s22] sm:$0x3] }
  0x5d   : > { %v279_v5 = vsel %vm271_vm1, %v269_v2, -inf  ;;  %vm264_vm5 = vcmask 0   ;;  %s253_s6 = scalar_lea.vmem [#allocation12], %s1083_s23  ;;  %s459_s11 = scalar_lea.sflag [#allocation13], %s1083_s23 }
  0x5e   : > { %v274_v6 = vmax.f32 %v272_v3, %v273_v4  ;;  %v280_v7 = vrot.slane %v279_v5, 4  ;;  %v327_v18 = vsub.s32 0, %v1105_v13  ;;  %v331_v19 = vsub.s32 1, %v1105_v13  ;;  %265 = vst.msk [vmem:[#allocation5] sm:$0x1] %vm264_vm5, %v911_v0  ;;  %s484_s4 = sshll.u32 %s253_s6, 4  ;;  %s1143_s4 = int_to_ptr.vmem [resolvable:$true] %s484_s4 }
  0x5f   : > { %s789_s19 = scalar_lea.vmem %s1143_s4, 16  ;;  %p1238_p0 = scmp.ne.s32.totalorder %s1230_s25, 0 }
  0x60   : > { %v275_v9 = vrot.slane %v274_v6, 2  ;;  %v281_v10 = vmax.f32 %v279_v5, %v280_v7  ;;  %v328_v23 = vrot.slane %v267_v21, %v327_v18  ;;  %v332_v24 = vrot.slane %v267_v21, %v331_v19  ;;  %p790_p8 = scmp.ne.s32.totalorder %s1143_s4, %s789_s19  ;;  %s913_s21 = smov [#allocation12]  }
  0x61   : > { %s793_s8 = sshll.u32 %s913_s21, 4  ;;  %s794_s8 = int_to_ptr.vmem [resolvable:$false] %s793_s8 }
  0x62   : > { %v276_v11 = vmax.f32 %v274_v6, %v275_v9  ;;  %v282_v12 = vrot.slane %v281_v10, 2  ;;  %vm333_vm2 = vcmp.eq.s32.totalorder %v1105_v13, %v328_v23  ;;  %vm334_vm3 = vcmp.eq.s32.totalorder %v1105_v13, %v332_v24  ;;  %p791_p7 = pnand %p790_p8, %p1238_p0  ;;  %s795_s10 = scalar_lea.vmem %s794_s8, 32 }
  0x63   : > { %v628_v27 = vsel %vm333_vm2, 1.0, %v911_v0  ;;  %v629_v28 = vsel %vm334_vm3, 1.0, %v911_v0  ;;  %p796_p10 = scmp.lt.s32.totalorder %s1143_s4, %s794_s8  ;;  %p797_p12 = scmp.lt.s32.totalorder %s795_s10, %s789_s19 }
  0x64   : > { %v277_v14 = vrot.slane %v276_v11, 1  ;;  %v283_v15 = vmax.f32 %v281_v10, %v282_v12  ;;  %v341_v29 = vcombine.low %v628_v27, %v629_v28  ;;  %p792_p4 = pneg %p791_p7 }
  0x65   : > { %p798_p1 = por %p797_p12, %p796_p10 }
  0x66   : > { %v278_v16 = vmax.f32 %v276_v11, %v277_v14  ;;  %v284_v17 = vrot.slane %v283_v15, 1  ;;  %v343_v30 = vmul.f32 %v341_v29, %v266_v1 }
  0x67   : > { %p799_p2 = pnand %p798_p1, %p792_p4 }
  0x68   : > { %v285_v20 = vmax.f32 %v283_v15, %v284_v17  ;;  %v345_v34 = vcombine.high %v343_v30, %v343_v30  ;;  %v347_v37 = vsel %vm271_vm1, %v343_v30, 0.0  ;;  %v912_v30 = vmov 0  }
  0x69   : > { %v348_v43 = vrot.slane %v347_v37, 4  ;;  %714 = vset.pattern.permute.xlu1 %v912_v30  ;;  %715 = vset.pattern.permute.xlu0 %v912_v30 }
  0x6a   : > { %v288_v22 = vcombine.low %v278_v16, %v285_v20  ;;  %v354_v40 = vsel %vm271_vm1, %v345_v34, 0.0 }
  0x6b   : > { %v355_v46 = vrot.slane %v354_v40, 4  ;;  %v349_v49 = vadd.f32 %v348_v43, %v347_v37 }
  0x6c   : > { %v290_v25 = vsub.f32 %v266_v1, %v288_v22 }
  0x6d   : > { %v356_v52 = vadd.f32 %v355_v46, %v354_v40  ;;  %v350_v54 = vrot.slane %v349_v49, 2 }
  0x6e   : > { %v291_v26 = vmul.f32 1.442695, %v290_v25 }
  0x6f   : > { %v357_v55 = vrot.slane %v356_v52, 2  ;;  %v351_v56 = vadd.f32 %v350_v54, %v349_v49 }
  0x70   : > { %717 = vpow2.f32 %v291_v26 }
  0x71   : > { %v358_v57 = vadd.f32 %v357_v55, %v356_v52  ;;  %v352_v58 = vrot.slane %v351_v56, 1 }
  0x73   : > { %v359_v60 = vrot.slane %v358_v57, 1  ;;  %v353_v1 = vadd.f32 %v352_v58, %v351_v56  ;;  %v397_v58 = vld [vmem:[#allocation5] sm:$0x1] }
  0x75   : > { %v360_v5 = vadd.f32 %v359_v60, %v358_v57 }
  0x7a   : > { %v718_v31 = vpop.eup %717 }
  0x7b   : > { %v294_v32 = vcombine.high %v718_v31, %v718_v31  ;;  %v296_v33 = vsel %vm271_vm1, %v718_v31, 0.0 }
  0x7c   : > { %v297_v35 = vrot.slane %v296_v33, 4 }
  0x7d   : > { %v303_v36 = vsel %vm271_vm1, %v294_v32, 0.0 }
  0x7e   : > { %v298_v38 = vadd.f32 %v297_v35, %v296_v33  ;;  %v304_v39 = vrot.slane %v303_v36, 4  ;;  %v365_v33 = vld [vmem:[#allocation2] sm:$0xf]  ;;  %v378_v35 = vld [vmem:[#allocation3] sm:$0xf] }
  0x80   : > { %v299_v41 = vrot.slane %v298_v38, 2  ;;  %v305_v42 = vadd.f32 %v304_v39, %v303_v36 }
  0x82   : > { %v300_v44 = vadd.f32 %v299_v41, %v298_v38  ;;  %v306_v45 = vrot.slane %v305_v42, 2 }
  0x84   : > { %v301_v47 = vrot.slane %v300_v44, 1  ;;  %v307_v48 = vadd.f32 %v306_v45, %v305_v42 }
  0x86   : > { %v302_v50 = vadd.f32 %v301_v47, %v300_v44  ;;  %v308_v51 = vrot.slane %v307_v48, 1 }
  0x88   : > { %v309_v53 = vadd.f32 %v308_v51, %v307_v48  ;;  %719 = vrcp.f32 %v302_v50 }
  0x89   : > { %721 = vlog2.f32 %v302_v50 }
  0x8a   : > { %723 = vrcp.f32 %v309_v53 }
  0x8b   : > { %725 = vlog2.f32 %v309_v53 }
  0x92   : > { %v720_v59 = vpop.eup %719 }
  0x93   : > { %v722_v61 = vpop.eup %721 }
  0x94   : > { %v724_v62 = vpop.eup %723  ;;  %v315_v63 = vmul.f32 0.6931472, %v722_v61 }
  0x95   : > { %v726_v2 = vpop.eup %725  ;;  %v320_v3 = vcombine.low %v720_v59, %v724_v62 }
  0x96   : > { %v317_v4 = vmul.f32 0.6931472, %v726_v2  ;;  %v361_v6 = vadd.f32 %v315_v63, %v278_v16  ;;  %v379_v16 = vsel %vm271_vm1, %v628_v27, 0.0 }
  0x97   : > { %v322_v7 = vmul.f32 %v718_v31, %v320_v3  ;;  %v386_v31 = vld [vmem:[#allocation4] sm:$0xf] }
  0x98   : > { %v362_v8 = vadd.f32 %v317_v4, %v285_v20  ;;  %v363_v9 = vsub.f32 %v361_v6, %v353_v1  ;;  %v380_v20 = vsel %vm271_vm1, %v629_v28, 0.0 }
  0x99   : > { %v388_v10 = vcombine.high %v322_v7, %v322_v7  ;;  %v390_v11 = vsel %vm271_vm1, %v322_v7, 0.0  ;;  %v366_v12 = vmul.f32 %v341_v29, %v322_v7  ;;  %v381_v29 = vadd.f32 %v380_v20, %v379_v16 }
  0x9a   : > { %v364_v14 = vsub.f32 %v362_v8, %v360_v5  ;;  %v399_v21 = vsel %vm398_vm4, %v363_v9, 0.0 }
  0x9b   : > { %v391_v15 = vsel %vm271_vm1, %v388_v10, 0.0  ;;  %v368_v17 = vcombine.high %v366_v12, %v366_v12  ;;  %v370_v19 = vsel %vm271_vm1, %v366_v12, 0.0 }
  0x9c   : > { %v392_v22 = vadd.f32 %v391_v15, %v390_v11  ;;  %v400_v23 = vsel %vm398_vm4, %v364_v14, 0.0 }
  0x9d   : > { %v371_v24 = vsel %vm271_vm1, %v368_v17, 0.0  ;;  %v401_v26 = vadd.f32 %v400_v23, %v399_v21 }
  0x9e   : > { %393 = vadd.xlane.f32.xlu1 %v392_v22  ;;  %v372_v25 = vadd.f32 %v371_v24, %v370_v19 }
  0xa0   : > { %373 = vadd.xlane.f32.xlu0 %v372_v25 }
  0xa2   : > { %402 = vadd.xlane.f32.xlu1 %v401_v26 }
  0xa4   : > { %382 = vadd.xlane.f32.xlu0 %v381_v29 }
 0x12b   : > { %v394_v32 = vpop.xlane.xlu1 %393 }
 0x12c   : > { %v395_v27 = vadd.f32 %v394_v32, %v386_v31 }
 0x12d   : > { %v374_v34 = vpop.xlane.xlu0 %373 }
 0x12e   : > { %396 = vst.msk [vmem:[#allocation4] sm:$0xf] %vm260_vm0, %v395_v27  ;;  %v375_v28 = vadd.f32 %v374_v34, %v365_v33 }
 0x12f   : > { %v403_v36 = vpop.xlane.xlu1 %402 }
 0x130   : > { %377 = vst.msk [vmem:[#allocation2] sm:$0xf] %vm260_vm0, %v375_v28  ;;  %v404_v37 = vrot.slane %v403_v36, 4 }
 0x131   : > { %v383_v38 = vpop.xlane.xlu0 %382 }
 0x132   : > { %v384_v39 = vadd.f32 %v383_v38, %v378_v35  ;;  %v405_v40 = vadd.f32 %v404_v37, %v403_v36 }
 0x134   : > { %385 = vst.msk [vmem:[#allocation3] sm:$0xf] %vm260_vm0, %v384_v39  ;;  %v406_v0 = vrot.slane %v405_v40, 2 }
 0x135   : > { %v421_v44 = vld [vmem:[#allocation4] sm:$0xf] }
 0x136   : > { %v407_v41 = vadd.f32 %v406_v0, %v405_v40 }
 0x137   : > { %v418_v43 = vld [vmem:[#allocation2] sm:$0xf] }
 0x138   : > { %v408_v42 = vrot.slane %v407_v41, 1  ;;  %v422_v48 = vsub.f32 %v421_v44, %v418_v43  ;;  %v423_v54 = vadd.f32 1e-05, %v418_v43 }
 0x13a   : > { %v409_v45 = vadd.f32 %v408_v42, %v407_v41  ;;  %v426_v51 = vmul.f32 0.5, %v422_v48 }
 0x13b   : > { %v419_v46 = vld [vmem:[#allocation3] sm:$0xf] }
 0x13c   : > { %v420_v47 = vsub.f32 %v419_v46, %v418_v43  ;;  %636 = vpush %v409_v45 }
 0x13e   : > { %v424_v49 = vmul.f32 0.5, %v420_v47 }
 0x140   : > { %v425_v50 = vadd.f32 %v424_v49, %v418_v43 }
 0x142   : > { %v427_v52 = vadd.f32 %v426_v51, %v425_v50 }
 0x144   : > { %v428_v53 = vadd.f32 1e-05, %v427_v52 }
 0x146   : > { %727 = vrcp.f32 %v428_v53 }
 0x150   : > { %v728_v55 = vpop.eup %727 }
 0x151   : > { %v430_v56 = vmul.f32 %v728_v55, %v423_v54 }
 0x153   : > { %v431_v57 = vsel %vm260_vm0, %v430_v56, 0.0 }
 0x154   : > { %432 = vadd.xlane.f32.xlu0 %v431_v57 }
 0x16d   : > { %s637_s24 = spop %636 }
 0x16e   : > { %v411_v59 = vstv %s637_s24 }
 0x16f   : > { %v412_v60 = vadd.f32 %v411_v59, %v397_v58 }
 0x171   : > { %414 = vst.msk [vmem:[#allocation5] sm:$0x1] %vm264_vm5, %v412_v60 }
 0x178   : > { %v443_v61 = vld [vmem:[#allocation5] sm:$0x1] }
 0x179   : > { %446 = vperm.xlu1 %714, %v443_v61  }
 0x1e1   : > { %v433_v62 = vpop.xlane.xlu0 %432 }
 0x1e2   : > { %v434_v63 = vrot.slane %v433_v62, 4 }
 0x1e4   : > { %v435_v1 = vadd.f32 %v434_v63, %v433_v62 }
 0x1e6   : > { %v436_v2 = vrot.slane %v435_v1, 2 }
 0x1e8   : > { %v437_v3 = vadd.f32 %v436_v2, %v435_v1 }
 0x1ea   : > { %v438_v4 = vrot.slane %v437_v3, 1 }
 0x1ec   : > { %v439_v5 = vadd.f32 %v438_v4, %v437_v3 }
 0x1ee   : > { %638 = vpush %v439_v5 }
 0x1f8   : > { %v447_v6 = vpop.permute.xlu1 %446 }
 0x1f9   : > { %v452_v7 = vrot.slane %v447_v6, %v327_v18 }
 0x1fb   : > { %453 = vst [vmem:[%s253_s6] sm:$0x1] %v452_v7 }
 0x1fc   : > { %802 = shalt.err (!%p799_p2)
}
 0x1fd   : > { %s803_s30 = scalar_lea.hbm %s1141_s28, 16  ;;  %s807_s22 = scalar_lea.hbm %s1225_s3, 32 }
 0x1fe   : > { %p804_p9 = scmp.ne.s32.totalorder %s1141_s28, %s803_s30  ;;  %p808_p6 = scmp.lt.u32.totalorder %s1141_s28, %s1225_s3 }
 0x1ff   : > { %p809_p13 = scmp.lt.u32.totalorder %s807_s22, %s803_s30  ;;  %p811_p8 = scmp.lt.u32.totalorder %s803_s30, %s1141_s28 }
 0x200   : > { %p805_p11 = pnand %p804_p9, %p1238_p0 }
 0x201   : > { %p810_p5 = por %p809_p13, %p808_p6 }
 0x202   : > { %p806_p3 = pneg %p805_p11 }
 0x203   : > { %p812_p7 = por %p811_p8, %p810_p5 }
 0x205   : > { %p813_p4 = pnand %p812_p7, %p806_p3 }
 0x207   : > { %816 = shalt.err (!%p813_p4)
}
 0x208   : > { %645 = dma.vmem_to_hbm [thread:$0]  (%p1238_p0), %s1143_s4, 16, %s1141_s28, %s459_s11  }
 0x209   : > { %s247_s5 = scalar_lea.vmem [#allocation11], %s1083_s23  ;;  %s1175_s10 = scalar_lea.hbm %s1224_s2, %s630_s29 }
 0x20a   : > { %s471_s18 = sshll.u32 %s247_s5, 4  ;;  %s455_s30 = scalar_lea.sflag [#allocation8], %s1083_s23  ;;  %s1168_s18 = int_to_ptr.vmem [resolvable:$true] %s471_s18 }
 0x20b   : > { %s817_s9 = scalar_lea.vmem %s1168_s18, 16  ;;  %s914_s4 = smov [#allocation11]  }
 0x20c   : > { %p818_p10 = scmp.ne.s32.totalorder %s1168_s18, %s817_s9  ;;  %s821_s28 = sshll.u32 %s914_s4, 4  ;;  %s822_s28 = int_to_ptr.vmem [resolvable:$false] %s821_s28 }
 0x20d   : > { %s823_s11 = scalar_lea.vmem %s822_s28, 32  ;;  %p824_p2 = scmp.lt.s32.totalorder %s1168_s18, %s822_s28 }
 0x20e   : > { %p819_p12 = pnand %p818_p10, %p1238_p0  ;;  %p825_p9 = scmp.lt.s32.totalorder %s823_s11, %s817_s9 }
 0x210   : > { %p820_p1 = pneg %p819_p12  ;;  %p826_p11 = por %p825_p9, %p824_p2 }
 0x212   : > { %p827_p3 = pnand %p826_p11, %p820_p1 }
 0x21f   : > { %s639_s19 = spop %638 }
 0x220   : > { %v441_v13 = vstv %s639_s19 }
 0x221   : > { %442 = vst [vmem:[%s247_s5] sm:$0x1] %v441_v13 }
 0x222   : > { %830 = shalt.err (!%p827_p3)
}
 0x223   : > { %s831_s15 = scalar_lea.hbm %s1175_s10, 16  ;;  %s835_s7 = scalar_lea.hbm %s1224_s2, 32 }
 0x224   : > { %p832_p6 = scmp.ne.s32.totalorder %s1175_s10, %s831_s15  ;;  %p836_p8 = scmp.lt.u32.totalorder %s1175_s10, %s1224_s2 }
 0x225   : > { %p837_p7 = scmp.lt.u32.totalorder %s835_s7, %s831_s15  ;;  %p839_p10 = scmp.lt.u32.totalorder %s831_s15, %s1175_s10 }
 0x226   : > { %p833_p13 = pnand %p832_p6, %p1238_p0 }
 0x227   : > { %p838_p4 = por %p837_p7, %p836_p8 }
 0x228   : > { %p834_p5 = pneg %p833_p13 }
 0x229   : > { %p840_p12 = por %p839_p10, %p838_p4 }
 0x22b   : > { %p841_p1 = pnand %p840_p12, %p834_p5 }
 0x22d   : > { %844 = shalt.err (!%p841_p1)
}
 0x22e   : > { %644 = dma.vmem_to_hbm [thread:$0]  (%p1238_p0), %s1168_s18, 16, %s1175_s10, %s455_s30  }
 0x22f PF: > { %s496_s6 = sand.u32 1, %s887_s12   ;;  %p1239_p2 = scmp.ne.s32.totalorder %s1231_s27, 0 }
 0x230   : > { %p1240_p9 = scmp.ge.s32.totalorder %s907_s17, 2  ;;  %s497_s5 = scalar_lea.sflag [#allocation8], %s496_s6 }
 0x232   : > { %p656_p11 = pnand %p1240_p9, %p1239_p2 }
 0x234   : > { %878 = dma.done.wait (!%p656_p11), %s497_s5, 16  }
 0x235   : > { %880 = vsyncadd (!%p656_p11), %s497_s5, 4294967280  ;;  %s505_s19 = scalar_lea.sflag [#allocation13], %s496_s6 }
 0x236   : > { %882 = dma.done.wait (!%p656_p11), %s505_s19, 16  }
 0x237   : > { %884 = vsyncadd (!%p656_p11), %s505_s19, 4294967280  ;;  %s26_s17 = sadd.s32 1, %s907_s17   ;;  %s1241_s12 = smov %s891_s13 }
 0x238   : > { %p23_p3 = scmp.ge.s32.totalorder %s26_s17, 4   ;;  %s1242_s13 = smov %s895_s14 }
 0x239   : > { %s1243_s14 = smov %s991_s26  ;;  %s1244_s15 = smov %s903_s16 }
 0x23a   : > { %s1245_s16 = smov %s1247_s20  ;;  %25 = sbr.rel (!%p23_p3) target bundleno = 10 (0xa), region = 111 }
 0x241   :  { %509 = vsyncpa [#allocation7], 1 }
 0x242   :  { %511 = vsyncpa [#allocation7 + $0x1], 1 }
 0x243   :  { %512 = vsyncpa [#allocation10], 1 }
 0x244   :  { %514 = vsyncpa [#allocation10 + $0x1], 1 }
 0x245   :  { %515 = vsyncpa [#allocation8], 1 }
 0x246   :  { %517 = vsyncpa [#allocation8 + $0x1], 1 }
 0x247   :  { %518 = vsyncpa [#allocation13], 1 }
 0x248   :  { %520 = vsyncpa [#allocation13 + $0x1], 1 }

</bundles_post_ra>
